<compile_context>
chip_gen: v7x
topology: tpu7x:2x2x1
jax: 0.10.0
libtpu: 0.0.40
codegen_flags: <defaults>
</compile_context>

<pallas_src>
import jax
import jax.numpy as jnp
from jax.experimental import pallas as pl
from jax.experimental.pallas import tpu as pltpu

_LANE = 128


def _copy_kernel(x_ref, o_ref):
    # Identity copy of the current tile (the squeeze itself is shape-only).
    o_ref[...] = x_ref[...]


def _tpu_tile_params():
    """Per-generation (tile_bytes, vmem_limit_bytes). Safe defaults if the
    hardware query is unavailable."""
    tile_bytes = 4 << 20          # 4 MiB tile -> 16 MiB live (2 IO x 2 bufs)
    vmem_limit = 48 << 20         # fits v7x's 64 MiB physical VMEM
    try:
        info = pltpu.get_tpu_info()
        vmem_bytes = getattr(info, "vmem_capacity_bytes", None)
        if vmem_bytes is not None:
            if vmem_bytes <= (64 << 20):
                # v7x-class: half the VMEM, ~3.2 TB/s HBM -> bigger tiles to
                # amortize the fixed ~0.35 us per-grid-step overhead.
                tile_bytes = 6 << 20    # 24 MiB live < 48 MiB scoped limit
                vmem_limit = 48 << 20
            else:
                # v5e / v6e: 128 MiB physical VMEM.
                tile_bytes = 4 << 20
                vmem_limit = 64 << 20
    except Exception:
        pass
    return tile_bytes, vmem_limit


def _choose_cols(total_padded):
    """Largest lane-dense column count (multiple of 128) dividing the
    (already 128-padded) element count."""
    for c in (2048, 1024, 512, 256, 128):
        if total_padded % c == 0:
            return c
    return _LANE  # unreachable: total_padded is a multiple of 128


def _pick_tile_rows(R, C, itemsize, tile_bytes):
    """Rows per tile: ~tile_bytes, multiple of 32 sublanes (native for f32,
    bf16 and int8/fp8 packing).  Splits a single-tile slab into >=2 grid
    steps when it is big enough, so v7x's two TensorCores both get work."""
    tr = max(1, tile_bytes // (C * itemsize))
    tr -= tr % 32
    tr = max(tr, 32)
    if tr < R:
        return tr
    if R >= 64 and R * C * itemsize >= (1 << 20):
        half = -(-R // 2)
        half += (-half) % 32
        return min(half, R)
    return R


def _pallas_copy_flat(x_flat, total, dtype):
    """Copy a flat contiguous array through VMEM with a lane-dense, tiled,
    software-pipelined Pallas kernel."""
    itemsize = jnp.dtype(dtype).itemsize

    # Lane-pad to a multiple of 128 so the 2D refactor is always lane-dense
    # (unmasked full-lane stores); costs < 128 extra elements of traffic.
    pad = (-total) % _LANE
    if pad:
        x_flat = jnp.pad(x_flat, (0, pad))
    total_p = total + pad

    C = _choose_cols(total_p)
    R = total_p // C
    x2d = x_flat.reshape(R, C)

    tile_bytes, vmem_limit = _tpu_tile_params()
    tr = _pick_tile_rows(R, C, itemsize, tile_bytes)
    grid = (pl.cdiv(R, tr),)

    out2d = pl.pallas_call(
        _copy_kernel,
        out_shape=jax.ShapeDtypeStruct((R, C), dtype),
        grid=grid,
        # Block last dim == full width C (a multiple of 128): tiling over
        # rows is legal for every shape; partial last block is masked.
        in_specs=[pl.BlockSpec((tr, C), lambda i: (i, 0))],
        out_specs=pl.BlockSpec((tr, C), lambda i: (i, 0)),
        compiler_params=pltpu.CompilerParams(
            dimension_semantics=("parallel",),
            vmem_limit_bytes=vmem_limit,
        ),
        cost_estimate=pl.CostEstimate(
            flops=0,
            transcendentals=0,
            bytes_accessed=2 * total_p * itemsize,
        ),
    )(x2d)

    out_flat = out2d.reshape(-1)
    if pad:
        out_flat = out_flat[:total]
    return out_flat


def squeeze_forward(h, dim=-1):
    """JAX/Pallas equivalent of torch.squeeze(h, dim=dim).

    Matches PyTorch semantics: a dimension is removed only if its size is 1,
    otherwise it is kept.  `dim` may be an int or a tuple of ints.
    """
    ndim = h.ndim
    dims = (dim,) if isinstance(dim, int) else tuple(dim)
    norm = tuple(d % ndim for d in dims)
    keep_shape = tuple(
        s for i, s in enumerate(h.shape) if not (i in norm and s == 1)
    )

    # No-op path (dim is not size-1): PyTorch returns a view; return the
    # input unchanged -- zero data movement.
    if keep_shape == h.shape:
        return h

    total = 1
    for s in h.shape:
        total *= s

    # Degenerate paths (scalar output or zero-sized tensor): pure metadata,
    # a reshape is free -- skip the kernel launch entirely.
    if total == 0 or len(keep_shape) == 0:
        return jnp.reshape(h, keep_shape)

    # Real squeeze path: lane-dense tiled copy through the Pallas kernel,
    # then a free metadata reshape back to the squeezed shape.
    out_flat = _pallas_copy_flat(h.reshape(-1), total, h.dtype)
    return out_flat.reshape(keep_shape)


if __name__ == "__main__":
    key = jax.random.PRNGKey(0)

    # Input consistent with the module: NCHW-style tensor whose last dim is 1.
    x = jax.random.normal(key, (2, 4, 16, 1), dtype=jnp.float32)
    out = jax.block_until_ready(squeeze_forward(x, dim=-1))
    ref = jnp.squeeze(x, axis=-1)
    assert out.shape == (2, 4, 16), out.shape
    assert out.dtype == x.dtype
    assert bool(jnp.allclose(out, ref))

    # torch.squeeze on a non-size-1 dim is a no-op (view); verify that path.
    y = jax.random.normal(jax.random.PRNGKey(1), (2, 4, 16, 8), dtype=jnp.float32)
    out2 = jax.block_until_ready(squeeze_forward(y, dim=-1))
    assert out2.shape == y.shape
    assert bool(jnp.allclose(out2, y))

    # Tuple-dim squeeze (PyTorch >= 2.0 semantics): remove only size-1 dims.
    z = jax.random.normal(jax.random.PRNGKey(2), (1, 4, 16, 1), dtype=jnp.float32)
    out3 = jax.block_until_ready(squeeze_forward(z, dim=(0, -1)))
    assert out3.shape == (4, 16), out3.shape
    assert bool(jnp.allclose(out3, jnp.squeeze(z, axis=(0, 3))))

    # Non-128-divisible element count exercises the lane-padding path.
    w = jax.random.normal(jax.random.PRNGKey(3), (1, 5, 7), dtype=jnp.float32)
    out4 = jax.block_until_ready(squeeze_forward(w, dim=0))
    assert out4.shape == (5, 7), out4.shape
    assert bool(jnp.allclose(out4, jnp.squeeze(w, axis=0)))

    print("KERNEL_OK")
</pallas_src>

<mosaic_0001>
module attributes {stable_mosaic.version = 11 : i64} {
  func.func @_copy_kernel(%arg0: i32, %arg1: memref<1x128xf32, #tpu.memory_space<vmem>>, %arg2: memref<1x128xf32, #tpu.memory_space<vmem>>) attributes {dimension_semantics = [#tpu.dimension_semantics<parallel>], iteration_bounds = array<i64: 1>, scalar_prefetch = 0 : i64, scratch_operands = 0 : i64, tpu.core_type = #tpu.core_type<tc>, window_params = [{transform_indices = @transform_0, window_bounds = array<i64: 1, 128>}, {transform_indices = @transform_1, window_bounds = array<i64: 1, 128>}]} {
    %c0 = arith.constant 0 : index
    %c0_0 = arith.constant 0 : index
    %0 = vector.load %arg1[%c0, %c0_0] : memref<1x128xf32, #tpu.memory_space<vmem>>, vector<1x128xf32>
    %c0_1 = arith.constant 0 : index
    %c0_2 = arith.constant 0 : index
    %1 = vector.load %arg2[%c0_1, %c0_2] : memref<1x128xf32, #tpu.memory_space<vmem>>, vector<1x128xf32>
    tpu.vector_store %arg2[%c0_1, %c0_2], %0 {strides = array<i32>} : memref<1x128xf32, #tpu.memory_space<vmem>>, vector<1x128xf32>,
    return
  }
  func.func @transform_0(%arg0: i32) -> (i32, i32) {
    %c0_i32 = arith.constant 0 : i32
    %c0_i32_0 = arith.constant 0 : i32
    return %arg0, %c0_i32 : i32, i32
  }
  func.func @transform_1(%arg0: i32) -> (i32, i32) {
    %c0_i32 = arith.constant 0 : i32
    %c0_i32_0 = arith.constant 0 : i32
    return %arg0, %c0_i32 : i32, i32
  }
}

</mosaic_0001>

<bundles_post_ra>
// kernel: tpu_custom_call.1
= control target key start
LH: loop header
LB: loop body
LE: loop exit
PB: predicated region body
PF: predicated region fallthrough
CT: control target
= control target key end

     0   :  { %6 = vsyncpa [#allocation3], 0  ;;  %s124_s0 = inlined_call_operand.hbm [shape: f32[1,128], index: 0, kind: input, shape index: {}]   ;;  %s125_s1 = inlined_call_operand.hbm [shape: f32[1,128], index: 1, kind: output, shape index: {}]  }
   0x1   :  { %7 = vsyncpa [#allocation4], 0  ;;  %s88_s6 = smov [#allocation2]   ;;  %s40_s10 = scalar_lea.hbm %s124_s0, 16 }
   0x2   :  { %s14_s7 = sshll.u32 %s88_s6, 4  ;;  %p41_p0 = scmp.ne.s32.totalorder %s124_s0, %s40_s10  ;;  %s15_s7 = int_to_ptr.vmem [resolvable:$true] %s14_s7 }
   0x3   :  { %p44_p1 = scmp.lt.u32.totalorder %s40_s10, %s124_s0 }
   0x5   :  { %p46_p2 = pnand %p44_p1, %p41_p0 }
   0x7   :  { %49 = shalt.err (!%p46_p2)
}
   0x8   :  { %s50_s15 = scalar_lea.vmem %s15_s7, 16  ;;  %s54_s16 = scalar_lea.vmem %s15_s7, 32 }
   0x9   :  { %p51_p3 = scmp.ne.s32.totalorder %s15_s7, %s50_s15  ;;  %p55_p4 = scmp.lt.s32.totalorder %s15_s7, %s15_s7 }
   0xa   :  { %p56_p5 = scmp.lt.s32.totalorder %s54_s16, %s50_s15 }
   0xc   :  { %p57_p6 = por %p56_p5, %p55_p4 }
   0xe   :  { %p58_p7 = pnand %p57_p6, %p51_p3 }
  0x10   :  { %61 = shalt.err (!%p58_p7)
}
  0x11   :  { %17 = dma.hbm_to_vmem [thread:$0]  %s124_s0, 16, %s15_s7, [#allocation3]  }
  0x12   :  { %84 = dma.done.wait [#allocation3], 16  }
  0x13   :  { %85 = vsyncadd [#allocation3], 4294967280  ;;  %s89_s19 = smov [#allocation5]   ;;  %v21_v0 = vld [vmem:[#allocation2] sm:$0x1] }
  0x14   :  { %s29_s20 = sshll.u32 %s89_s19, 4  ;;  %22 = vst [vmem:[#allocation5] sm:$0x1] %v21_v0  ;;  %s30_s20 = int_to_ptr.vmem [resolvable:$true] %s29_s20 }
  0x15   :  { %s62_s21 = scalar_lea.vmem %s30_s20, 16  ;;  %s66_s22 = scalar_lea.vmem %s30_s20, 32 }
  0x16   :  { %p63_p8 = scmp.ne.s32.totalorder %s30_s20, %s62_s21  ;;  %p67_p9 = scmp.lt.s32.totalorder %s30_s20, %s30_s20 }
  0x17   :  { %p68_p10 = scmp.lt.s32.totalorder %s66_s22, %s62_s21 }
  0x19   :  { %p69_p11 = por %p68_p10, %p67_p9 }
  0x1b   :  { %p70_p12 = pnand %p69_p11, %p63_p8 }
  0x1d   :  { %73 = shalt.err (!%p70_p12)
}
  0x1e   :  { %s74_s25 = scalar_lea.hbm %s125_s1, 16 }
  0x1f   :  { %p75_p13 = scmp.ne.s32.totalorder %s125_s1, %s74_s25  ;;  %p78_p0 = scmp.lt.u32.totalorder %s74_s25, %s125_s1 }
  0x21   :  { %p80_p1 = pnand %p78_p0, %p75_p13 }
  0x23   :  { %83 = shalt.err (!%p80_p1)
}
  0x24   :  { %32 = dma.vmem_to_hbm [thread:$0]  %s30_s20, 16, %s125_s1, [#allocation4]  }
  0x25   :  { %86 = dma.done.wait [#allocation4], 16  }
  0x26   :  { %87 = vsyncadd [#allocation4], 4294967280 }
  0x27   :  { %36 = vsyncpa [#allocation3], 1 }
  0x28   :  { %37 = vsyncpa [#allocation4], 1 }

</bundles_post_ra>
